<compile_context>
chip_gen: v5e
topology: v5e:2x2
jax: 0.10.0
libtpu: 0.0.40
codegen_flags: <defaults>
</compile_context>

<pallas_src>
import functools

import jax
import jax.numpy as jnp
from jax.experimental import pallas as pl
from jax.experimental.pallas import tpu as pltpu

LRELU_SLOPE = 0.1            # modules.LRELU_SLOPE in MMVC
_HALO_PAD = 128              # lane-aligned halo carried with every length tile
_VMEM_TARGET = 10 * 2**20    # per-call working-set target (fits v7x's 64 MiB with 2x buffering)


def _cdiv(a, b):
    return -(-a // b)


def _round_up(a, b):
    return _cdiv(a, b) * b


# ----------------------------------------------------------------------------
# VMEM budgeting / tile selection
# ----------------------------------------------------------------------------
def _vmem_bytes(C_in, C_ot, K, l_tile, n_adds, in_isz, out_isz):
    b = 0
    b += 2 * C_in * l_tile * in_isz                 # x main (double buffered)
    b += 2 * C_in * _HALO_PAD * in_isz              # halo
    b += 2 * C_ot * K * C_in * in_isz               # weights
    b += 2 * C_ot * 4                               # bias (f32)
    b += 2 * n_adds * C_ot * l_tile * out_isz       # fused addends
    b += 2 * C_ot * l_tile * out_isz                # output
    b += C_in * (l_tile + _HALO_PAD) * in_isz       # xcomb scratch
    b += K * C_in * l_tile * in_isz                 # staging scratch
    b += C_ot * l_tile * 4                          # f32 accumulator temp
    return b


def _choose_l_tile(L_valid, C_in, C_ot, K, n_adds, in_isz, out_isz):
    cap = _round_up(max(L_valid, 1), 128)
    for lt in (4096, 2048, 1024, 512, 256, 128):
        lt = min(lt, cap)
        if _vmem_bytes(C_in, C_ot, K, lt, n_adds, in_isz, out_isz) <= _VMEM_TARGET:
            return lt
    return 128


# ----------------------------------------------------------------------------
# Fused, tiled conv1d kernel (stride 1, dilation, fused activations / adds / scale)
# ----------------------------------------------------------------------------
def _conv1d_kernel(x_ref, h_ref, w_ref, b_ref, *rest,
                   K, dilation, C_in, l_tile, n_adds,
                   pre_leaky, slope, post_tanh, out_scale):
    # x_ref: (1, C_in, l_tile)            main length tile
    # h_ref: (1, 1, C_in, _HALO_PAD)      right halo for this tile
    # w_ref: (C_out_tile, K*C_in)         tap-fused weights
    # b_ref: (C_out_tile, 1)              f32 bias
    # rest : [add_refs...], o_ref, xcomb_scratch, stage_scratch
    add_refs = rest[:n_adds]
    o_ref = rest[n_adds]
    xcomb_ref = rest[n_adds + 1]
    stage_ref = rest[n_adds + 2]

    # Stage the input tile once per (n, l); it is reused across all C_out tiles (co axis).
    @pl.when(pl.program_id(2) == 0)
    def _stage_input():
        xm = x_ref[0].astype(jnp.float32)           # (C_in, l_tile)
        xh = h_ref[0, 0].astype(jnp.float32)        # (C_in, _HALO_PAD)
        if pre_leaky:                               # leaky(0) == 0, so zero padding is safe
            xm = jnp.where(xm >= 0, xm, slope * xm)
            xh = jnp.where(xh >= 0, xh, slope * xh)
        xcomb_ref[:, :l_tile] = xm.astype(xcomb_ref.dtype)
        xcomb_ref[:, l_tile:] = xh.astype(xcomb_ref.dtype)
        for k in range(K):                          # static, small -> unrolled
            stage_ref[pl.ds(k * C_in, C_in), :] = xcomb_ref[:, pl.ds(k * dilation, l_tile)]

    # One MXU matmul contracting over K*C_in (tap-fused).
    acc = jnp.dot(w_ref[...], stage_ref[...], preferred_element_type=jnp.float32)
    acc = acc + b_ref[...]                          # (C_out_t, 1) broadcasts over length
    for a_ref in add_refs:                          # fused residual / xs accumulation
        acc = acc + a_ref[0].astype(jnp.float32)
    if out_scale != 1.0:                            # fused "/ num_kernels"
        acc = acc * out_scale
    if post_tanh:
        acc = jnp.tanh(acc)
    o_ref[0] = acc.astype(o_ref.dtype)


def conv1d_pallas(x, w, b=None, *, dilation=1, pad_left=0, pad_right=0,
                  pre_leaky=False, slope=LRELU_SLOPE, post_tanh=False,
                  adds=(), out_scale=1.0, compute_dtype=None, out_dtype=None):
    """x: (N, C_in, L), w: (C_out, C_in, K), b: (C_out,) | None, adds: arrays (N, C_out, L_out).

    Returns (N, C_out, L_out) with L_out = L + pad_left + pad_right - (K-1)*dilation.
    """
    N, C_in, L = x.shape
    C_out, C_in_w, K = w.shape
    assert C_in_w == C_in
    cdt = jnp.dtype(compute_dtype) if compute_dtype is not None else x.dtype
    odt = jnp.dtype(out_dtype) if out_dtype is not None else cdt

    halo = (K - 1) * dilation
    assert halo <= _HALO_PAD, "receptive field exceeds the 128-lane halo"
    L_valid = L + pad_left + pad_right - halo
    assert L_valid > 0

    # C_out tiling keeps the accumulator / weight tile MXU sized.
    if C_out > 256 and C_out % 256 == 0:
        C_ot = 256
    else:
        C_ot = C_out
    num_co = C_out // C_ot

    in_isz = jnp.dtype(cdt).itemsize
    out_isz = jnp.dtype(odt).itemsize
    n_adds = len(adds)
    l_tile = _choose_l_tile(L_valid, C_in, C_ot, K, n_adds, in_isz, out_isz)
    num_l = _cdiv(L_valid, l_tile)
    L_total = num_l * l_tile
    Lp = L_total + _HALO_PAD

    # Padded main input and the small per-tile halo array (plain-JAX glue).
    x_p = jnp.pad(x.astype(cdt), ((0, 0), (0, 0), (pad_left, Lp - L - pad_left)))
    x_main = x_p[:, :, :L_total]
    x_tail = jnp.pad(x_p[:, :, l_tile:], ((0, 0), (0, 0), (0, l_tile - _HALO_PAD)))
    x_halo = x_tail.reshape(N, C_in, num_l, l_tile)[:, :, :, :_HALO_PAD]
    x_halo = jnp.transpose(x_halo, (0, 2, 1, 3))            # (N, num_l, C_in, HALO)

    # Tap-fused weights: row layout [tap0: C_in rows][tap1: C_in rows]...
    w2d = jnp.transpose(w, (0, 2, 1)).reshape(C_out, K * C_in).astype(cdt)
    if b is None:
        b = jnp.zeros((C_out,), jnp.float32)
    b2 = b.astype(jnp.float32).reshape(C_out, 1)
    adds_p = tuple(jnp.pad(a, ((0, 0), (0, 0), (0, L_total - a.shape[2]))) for a in adds)

    kernel = functools.partial(
        _conv1d_kernel, K=K, dilation=dilation, C_in=C_in, l_tile=l_tile,
        n_adds=n_adds, pre_leaky=pre_leaky, slope=slope,
        post_tanh=post_tanh, out_scale=out_scale)

    in_specs = [
        pl.BlockSpec((1, C_in, l_tile), lambda n, l, co: (n, 0, l)),
        pl.BlockSpec((1, 1, C_in, _HALO_PAD), lambda n, l, co: (n, l, 0, 0)),
        pl.BlockSpec((C_ot, K * C_in), lambda n, l, co: (co, 0)),
        pl.BlockSpec((C_ot, 1), lambda n, l, co: (co, 0)),
    ]
    in_specs += [pl.BlockSpec((1, C_ot, l_tile), lambda n, l, co: (n, co, l))
                 for _ in range(n_adds)]

    est = _vmem_bytes(C_in, C_ot, K, l_tile, n_adds, in_isz, out_isz)
    vmem_limit = int(min(max(4 * est, 32 * 2**20), 56 * 2**20))   # stays within v7x's 64 MiB

    cost = pl.CostEstimate(
        flops=int(2 * N * C_out * K * C_in * L_total),
        transcendentals=int(N * C_out * L_total) if post_tanh else 0,
        bytes_accessed=int(x_main.size * in_isz + x_halo.size * in_isz
                           + w2d.size * in_isz + b2.size * 4
                           + sum(a.size * a.dtype.itemsize for a in adds_p)
                           + N * C_out * L_total * out_isz),
    )

    out = pl.pallas_call(
        kernel,
        out_shape=jax.ShapeDtypeStruct((N, C_out, L_total), odt),
        grid=(N, num_l, num_co),
        in_specs=in_specs,
        out_specs=pl.BlockSpec((1, C_ot, l_tile), lambda n, l, co: (n, co, l)),
        scratch_shapes=[
            pltpu.VMEM((C_in, l_tile + _HALO_PAD), cdt),   # staged (leaky'd) tile + halo
            pltpu.VMEM((K * C_in, l_tile), cdt),           # tap-fused matmul operand
        ],
        compiler_params=pltpu.CompilerParams(
            dimension_semantics=("parallel", "parallel", "arbitrary"),
            vmem_limit_bytes=vmem_limit),
        cost_estimate=cost,
    )(x_main, x_halo, w2d, b2, *adds_p)
    return out[:, :, :L_valid]


# ----------------------------------------------------------------------------
# ConvTranspose1d via polyphase decomposition (no zero-insertion)
# ----------------------------------------------------------------------------
def conv_transpose1d_polyphase(x, w_t, b, *, stride, pad,
                               pre_leaky=False, slope=LRELU_SLOPE,
                               compute_dtype=None):
    """torch.nn.ConvTranspose1d(C_in, C_out, K, stride, padding=pad).  w_t: (C_in, C_out, K)."""
    C_in, C_out, K = w_t.shape
    s = int(stride)
    assert 0 <= pad <= K - 1
    # output length must be L*stride for the phase interleave below (HiFi-GAN: pad=(K-s)//2)
    assert K - 2 * pad == s, "polyphase path expects padding = (K - stride) // 2"

    # y[q*s + r] = sum_j A_r[j] . x[q + dmin + j], with A_r[j] = w_t[..., -(dmin+j)*s + r + pad]
    dmin = -((K - 1 - pad) // s)
    dmax = (s - 1 + pad) // s
    Kc = dmax - dmin + 1
    Wbig = jnp.zeros((C_out * s, C_in, Kc), w_t.dtype)
    for r in range(s):
        for j in range(Kc):
            k_orig = -(dmin + j) * s + r + pad
            if 0 <= k_orig < K:
                Wbig = Wbig.at[r::s, :, j].set(jnp.transpose(w_t[:, :, k_orig], (1, 0)))
    b_big = None if b is None else jnp.repeat(b, s)

    out_big = conv1d_pallas(x, Wbig, b_big, dilation=1,
                            pad_left=-dmin, pad_right=dmax,
                            pre_leaky=pre_leaky, slope=slope,
                            compute_dtype=compute_dtype)          # (N, C_out*s, L)
    N, _, Lq = out_big.shape
    y = out_big.reshape(N, C_out, s, Lq)
    y = jnp.transpose(y, (0, 1, 3, 2)).reshape(N, C_out, Lq * s)  # interleave phases
    return y


# ----------------------------------------------------------------------------
# Parameter construction (deterministic, synthetic — weight_norm at init == raw weight)
# ----------------------------------------------------------------------------
def _rand(key, shape, scale=0.05):
    return (scale * jax.random.normal(key, shape)).astype(jnp.float32)


def init_generator_params(key, initial_channel, resblock, resblock_kernel_sizes,
                          resblock_dilation_sizes, upsample_rates,
                          upsample_initial_channel, upsample_kernel_sizes):
    keys = iter(jax.random.split(key, 256))
    p = {}
    uic = upsample_initial_channel
    p["conv_pre_w"] = _rand(next(keys), (uic, initial_channel, 7))
    p["conv_pre_b"] = _rand(next(keys), (uic,))
    p["ups"] = []
    for i, (u, k) in enumerate(zip(upsample_rates, upsample_kernel_sizes)):
        c_in = uic // (2 ** i)
        c_out = uic // (2 ** (i + 1))
        p["ups"].append({
            "w": _rand(next(keys), (c_in, c_out, k), scale=0.01),   # init_weights: N(0, 0.01)
            "b": _rand(next(keys), (c_out,), scale=0.01),
        })
    p["resblocks"] = []
    last_ch = uic
    for i in range(len(upsample_rates)):
        ch = uic // (2 ** (i + 1))
        for (k, ds) in zip(resblock_kernel_sizes, resblock_dilation_sizes):
            rb = {"kernel_size": k, "dilations": tuple(ds), "convs1": [], "convs2": []}
            for d in ds:
                rb["convs1"].append((_rand(next(keys), (ch, ch, k), 0.01),
                                     _rand(next(keys), (ch,), 0.01)))
                if resblock == "1":
                    rb["convs2"].append((_rand(next(keys), (ch, ch, k), 0.01),
                                         _rand(next(keys), (ch,), 0.01)))
            p["resblocks"].append(rb)
        last_ch = ch
    # VITS/MMVC Generator uses Conv1d(ch, 1, 7, 1, padding=3, bias=False) for conv_post.
    p["conv_post_w"] = _rand(next(keys), (1, last_ch, 7))
    return p


# ----------------------------------------------------------------------------
# Forward pass (mirrors Generator.forward; residual adds / xs accumulation / scale fused)
# ----------------------------------------------------------------------------
def _resblock1_forward(rb, x, *, xs_accum, is_last_rb, num_kernels, cdt):
    k = rb["kernel_size"]
    n_pairs = len(rb["dilations"])
    for idx, ((w1, b1), (w2, b2), d) in enumerate(
            zip(rb["convs1"], rb["convs2"], rb["dilations"])):
        pad1 = (k * d - d) // 2
        xt = conv1d_pallas(x, w1, b1, dilation=d, pad_left=pad1, pad_right=pad1,
                           pre_leaky=True, slope=LRELU_SLOPE, compute_dtype=cdt)
        pad2 = (k - 1) // 2
        adds = [x]                               # residual add fused into the conv kernel
        scale = 1.0
        if idx == n_pairs - 1:
            if xs_accum is not None:
                adds.append(xs_accum)            # running xs accumulation fused
            if is_last_rb:
                scale = 1.0 / num_kernels        # "/ num_kernels" fused
        x = conv1d_pallas(xt, w2, b2, dilation=1, pad_left=pad2, pad_right=pad2,
                          pre_leaky=True, slope=LRELU_SLOPE,
                          adds=tuple(adds), out_scale=scale, compute_dtype=cdt)
    return x


def _resblock2_forward(rb, x, *, xs_accum, is_last_rb, num_kernels, cdt):
    k = rb["kernel_size"]
    n = len(rb["dilations"])
    for idx, ((w1, b1), d) in enumerate(zip(rb["convs1"], rb["dilations"])):
        pad1 = (k * d - d) // 2
        adds = [x]
        scale = 1.0
        if idx == n - 1:
            if xs_accum is not None:
                adds.append(xs_accum)
            if is_last_rb:
                scale = 1.0 / num_kernels
        x = conv1d_pallas(x, w1, b1, dilation=d, pad_left=pad1, pad_right=pad1,
                          pre_leaky=True, slope=LRELU_SLOPE,
                          adds=tuple(adds), out_scale=scale, compute_dtype=cdt)
    return x


def generator_forward(params, x, *, resblock, resblock_kernel_sizes,
                      upsample_rates, upsample_kernel_sizes,
                      compute_dtype=jnp.bfloat16):
    cdt = compute_dtype
    nk = len(resblock_kernel_sizes)
    nu = len(upsample_rates)
    rb_fwd = _resblock1_forward if resblock == "1" else _resblock2_forward

    x = conv1d_pallas(x, params["conv_pre_w"], params["conv_pre_b"],
                      pad_left=3, pad_right=3, compute_dtype=cdt)
    for i in range(nu):
        u = upsample_rates[i]
        k = upsample_kernel_sizes[i]
        up = params["ups"][i]
        # F.leaky_relu(x, LRELU_SLOPE) is fused into the polyphase transposed conv.
        x = conv_transpose1d_polyphase(x, up["w"], up["b"], stride=u, pad=(k - u) // 2,
                                       pre_leaky=True, slope=LRELU_SLOPE,
                                       compute_dtype=cdt)
        xs = None
        for j in range(nk):
            xs = rb_fwd(params["resblocks"][i * nk + j], x,
                        xs_accum=xs, is_last_rb=(j == nk - 1),
                        num_kernels=nk, cdt=cdt)
        x = xs
    # final F.leaky_relu (default slope 0.01), conv_post (bias=False, as in VITS), tanh
    x = conv1d_pallas(x, params["conv_post_w"], None, pad_left=3, pad_right=3,
                      pre_leaky=True, slope=0.01, post_tanh=True,
                      compute_dtype=cdt, out_dtype=jnp.float32)
    return x


# ----------------------------------------------------------------------------
# Plain-JAX references for sanity checks
# ----------------------------------------------------------------------------
def _leaky_ref(x, slope):
    return jnp.where(x >= 0, x, slope * x)


def _conv1d_ref(x, w, b, dilation=1, pad_left=0, pad_right=0):
    x_p = jnp.pad(x, ((0, 0), (0, 0), (pad_left, pad_right)))
    K = w.shape[2]
    L_out = x_p.shape[2] - (K - 1) * dilation
    acc = jnp.zeros((x.shape[0], w.shape[0], L_out), jnp.float32)
    for k in range(K):
        acc = acc + jnp.einsum("oi,nil->nol", w[:, :, k],
                               x_p[:, :, k * dilation:k * dilation + L_out])
    if b is not None:
        acc = acc + b[None, :, None]
    return acc


def _conv_transpose_ref(x, w_t, b, stride, pad):
    K = w_t.shape[2]
    w_conv = jnp.flip(jnp.transpose(w_t, (1, 0, 2)), axis=2)
    N, C, L = x.shape
    if stride > 1:
        z = jnp.zeros((N, C, L, stride), x.dtype).at[:, :, :, 0].set(x)
        x_up = z.reshape(N, C, L * stride)[:, :, :(L - 1) * stride + 1]
    else:
        x_up = x
    return _conv1d_ref(x_up, w_conv, b, 1, K - 1 - pad, K - 1 - pad)


if __name__ == "__main__":
    # Small synthetic config consistent with the module's constructor.
    initial_channel = 8
    resblock = "1"
    resblock_kernel_sizes = [3, 5]
    resblock_dilation_sizes = [[1, 3], [1, 3]]
    upsample_rates = [2, 2]
    upsample_initial_channel = 32
    upsample_kernel_sizes = [4, 4]

    key = jax.random.PRNGKey(0)
    k_param, k_x, k_a, k_r = jax.random.split(key, 4)
    params = init_generator_params(k_param, initial_channel, resblock,
                                   resblock_kernel_sizes, resblock_dilation_sizes,
                                   upsample_rates, upsample_initial_channel,
                                   upsample_kernel_sizes)

    N, L = 2, 16
    x = jax.random.normal(k_x, (N, initial_channel, L), dtype=jnp.float32)

    # check 1: plain conv (conv_pre) vs reference (f32)
    y_pal = conv1d_pallas(x, params["conv_pre_w"], params["conv_pre_b"],
                          pad_left=3, pad_right=3)
    y_ref = _conv1d_ref(x, params["conv_pre_w"], params["conv_pre_b"], 1, 3, 3)
    assert jnp.allclose(y_pal, y_ref, atol=1e-3, rtol=1e-3), "conv_pre mismatch"

    # check 2: dilated conv with fused leaky / residual add / output scale (f32)
    ch = upsample_initial_channel // 2
    xt = jax.random.normal(k_a, (N, ch, 24), dtype=jnp.float32)
    res = jax.random.normal(k_r, (N, ch, 24), dtype=jnp.float32)
    w1, b1 = params["resblocks"][0]["convs1"][1]          # kernel 3, dilation 3 -> pad 3
    y_pal = conv1d_pallas(xt, w1, b1, dilation=3, pad_left=3, pad_right=3,
                          pre_leaky=True, adds=(res,), out_scale=0.5)
    y_ref = 0.5 * (_conv1d_ref(_leaky_ref(xt, LRELU_SLOPE), w1, b1, 3, 3, 3) + res)
    assert jnp.allclose(y_pal, y_ref, atol=1e-3, rtol=1e-3), "fused conv mismatch"

    # check 3: polyphase ConvTranspose1d vs zero-insertion reference (f32)
    x32 = jax.random.normal(k_a, (N, upsample_initial_channel, L), dtype=jnp.float32)
    up0 = params["ups"][0]
    y_pal = conv_transpose1d_polyphase(x32, up0["w"], up0["b"], stride=2, pad=1,
                                       pre_leaky=True)
    y_ref = _conv_transpose_ref(_leaky_ref(x32, LRELU_SLOPE), up0["w"], up0["b"], 2, 1)
    assert y_pal.shape == y_ref.shape, (y_pal.shape, y_ref.shape)
    assert jnp.allclose(y_pal, y_ref, atol=1e-3, rtol=1e-3), "conv_transpose mismatch"

    # full generator forward: bf16 activations/weights, f32 MXU accumulation
    out = generator_forward(params, x,
                            resblock=resblock,
                            resblock_kernel_sizes=resblock_kernel_sizes,
                            upsample_rates=upsample_rates,
                            upsample_kernel_sizes=upsample_kernel_sizes,
                            compute_dtype=jnp.bfloat16)
    out = jax.block_until_ready(out)
    expected_len = L
    for u in upsample_rates:
        expected_len *= u
    assert out.shape == (N, 1, expected_len), out.shape
    assert bool(jnp.all(jnp.isfinite(out)))
    print("KERNEL_OK")
</pallas_src>

<mosaic_0001>
module attributes {stable_mosaic.version = 11 : i64} {
  func.func @_conv1d_kernel(%arg0: i32, %arg1: i32, %arg2: i32, %arg3: memref<1x8x128xf32, #tpu.memory_space<vmem>>, %arg4: memref<1x1x8x128xf32, #tpu.memory_space<vmem>>, %arg5: memref<32x56xf32, #tpu.memory_space<vmem>>, %arg6: memref<32x1xf32, #tpu.memory_space<vmem>>, %arg7: memref<1x32x128xf32, #tpu.memory_space<vmem>>, %arg8: memref<8x256xf32, #tpu.memory_space<vmem>>, %arg9: memref<56x128xf32, #tpu.memory_space<vmem>>) attributes {dimension_semantics = [#tpu.dimension_semantics<parallel>, #tpu.dimension_semantics<parallel>, #tpu.dimension_semantics<arbitrary>], iteration_bounds = array<i64: 2, 1, 1>, scalar_prefetch = 0 : i64, scratch_operands = 2 : i64, tpu.core_type = #tpu.core_type<tc>, window_params = [{transform_indices = @transform_0, window_bounds = array<i64: 1, 8, 128>}, {transform_indices = @transform_1, window_bounds = array<i64: 1, 1, 8, 128>}, {transform_indices = @transform_2, window_bounds = array<i64: 32, 56>}, {transform_indices = @transform_3, window_bounds = array<i64: 32, 1>}, {transform_indices = @transform_4, window_bounds = array<i64: 1, 32, 128>}]} {
    %c0_i32 = arith.constant 0 : i32
    %0 = arith.cmpi eq, %arg2, %c0_i32 : i32
    %1 = arith.extui %0 : i1 to i32
    %c0_i32_0 = arith.constant 0 : i32
    %2 = arith.cmpi ne, %1, %c0_i32_0 : i32
    scf.if %2 {
      %c0_9 = arith.constant 0 : index
      %c0_10 = arith.constant 0 : index
      %c0_11 = arith.constant 0 : index
      %12 = vector.load %arg3[%c0_9, %c0_10, %c0_11] : memref<1x8x128xf32, #tpu.memory_space<vmem>>, vector<1x8x128xf32>
      %13 = vector.shape_cast %12 : vector<1x8x128xf32> to vector<8x128xf32>
      %c0_12 = arith.constant 0 : index
      %c0_13 = arith.constant 0 : index
      %c0_14 = arith.constant 0 : index
      %c0_15 = arith.constant 0 : index
      %14 = vector.load %arg4[%c0_12, %c0_13, %c0_14, %c0_15] : memref<1x1x8x128xf32, #tpu.memory_space<vmem>>, vector<1x1x8x128xf32>
      %15 = vector.shape_cast %14 : vector<1x1x8x128xf32> to vector<8x128xf32>
      %c0_16 = arith.constant 0 : index
      %c0_17 = arith.constant 0 : index
      %16 = vector.load %arg8[%c0_16, %c0_17] : memref<8x256xf32, #tpu.memory_space<vmem>>, vector<8x128xf32>
      tpu.vector_store %arg8[%c0_16, %c0_17], %13 {strides = array<i32>} : memref<8x256xf32, #tpu.memory_space<vmem>>, vector<8x128xf32>,
      %c0_18 = arith.constant 0 : index
      %c128 = arith.constant 128 : index
      %17 = vector.load %arg8[%c0_18, %c128] : memref<8x256xf32, #tpu.memory_space<vmem>>, vector<8x128xf32>
      tpu.vector_store %arg8[%c0_18, %c128], %15 {strides = array<i32>} : memref<8x256xf32, #tpu.memory_space<vmem>>, vector<8x128xf32>,
      %c0_19 = arith.constant 0 : index
      %c0_20 = arith.constant 0 : index
      %18 = vector.load %arg8[%c0_19, %c0_20] : memref<8x256xf32, #tpu.memory_space<vmem>>, vector<8x128xf32>
      %c0_21 = arith.constant 0 : index
      %c0_22 = arith.constant 0 : index
      %19 = vector.load %arg9[%c0_21, %c0_22] : memref<56x128xf32, #tpu.memory_space<vmem>>, vector<8x128xf32>
      tpu.vector_store %arg9[%c0_21, %c0_22], %18 {strides = array<i32>} : memref<56x128xf32, #tpu.memory_space<vmem>>, vector<8x128xf32>,
      %c0_23 = arith.constant 0 : index
      %c1 = arith.constant 1 : index
      %20 = vector.load %arg8[%c0_23, %c1] : memref<8x256xf32, #tpu.memory_space<vmem>>, vector<8x128xf32>
      %c8 = arith.constant 8 : index
      %c0_24 = arith.constant 0 : index
      %21 = vector.load %arg9[%c8, %c0_24] : memref<56x128xf32, #tpu.memory_space<vmem>>, vector<8x128xf32>
      tpu.vector_store %arg9[%c8, %c0_24], %20 {strides = array<i32>} : memref<56x128xf32, #tpu.memory_space<vmem>>, vector<8x128xf32>,
      %c0_25 = arith.constant 0 : index
      %c2 = arith.constant 2 : index
      %22 = vector.load %arg8[%c0_25, %c2] : memref<8x256xf32, #tpu.memory_space<vmem>>, vector<8x128xf32>
      %c16 = arith.constant 16 : index
      %c0_26 = arith.constant 0 : index
      %23 = vector.load %arg9[%c16, %c0_26] : memref<56x128xf32, #tpu.memory_space<vmem>>, vector<8x128xf32>
      tpu.vector_store %arg9[%c16, %c0_26], %22 {strides = array<i32>} : memref<56x128xf32, #tpu.memory_space<vmem>>, vector<8x128xf32>,
      %c0_27 = arith.constant 0 : index
      %c3 = arith.constant 3 : index
      %24 = vector.load %arg8[%c0_27, %c3] : memref<8x256xf32, #tpu.memory_space<vmem>>, vector<8x128xf32>
      %c24 = arith.constant 24 : index
      %c0_28 = arith.constant 0 : index
      %25 = vector.load %arg9[%c24, %c0_28] : memref<56x128xf32, #tpu.memory_space<vmem>>, vector<8x128xf32>
      tpu.vector_store %arg9[%c24, %c0_28], %24 {strides = array<i32>} : memref<56x128xf32, #tpu.memory_space<vmem>>, vector<8x128xf32>,
      %c0_29 = arith.constant 0 : index
      %c4 = arith.constant 4 : index
      %26 = vector.load %arg8[%c0_29, %c4] : memref<8x256xf32, #tpu.memory_space<vmem>>, vector<8x128xf32>
      %c32 = arith.constant 32 : index
      %c0_30 = arith.constant 0 : index
      %27 = vector.load %arg9[%c32, %c0_30] : memref<56x128xf32, #tpu.memory_space<vmem>>, vector<8x128xf32>
      tpu.vector_store %arg9[%c32, %c0_30], %26 {strides = array<i32>} : memref<56x128xf32, #tpu.memory_space<vmem>>, vector<8x128xf32>,
      %c0_31 = arith.constant 0 : index
      %c5 = arith.constant 5 : index
      %28 = vector.load %arg8[%c0_31, %c5] : memref<8x256xf32, #tpu.memory_space<vmem>>, vector<8x128xf32>
      %c40 = arith.constant 40 : index
      %c0_32 = arith.constant 0 : index
      %29 = vector.load %arg9[%c40, %c0_32] : memref<56x128xf32, #tpu.memory_space<vmem>>, vector<8x128xf32>
      tpu.vector_store %arg9[%c40, %c0_32], %28 {strides = array<i32>} : memref<56x128xf32, #tpu.memory_space<vmem>>, vector<8x128xf32>,
      %c0_33 = arith.constant 0 : index
      %c6 = arith.constant 6 : index
      %30 = vector.load %arg8[%c0_33, %c6] : memref<8x256xf32, #tpu.memory_space<vmem>>, vector<8x128xf32>
      %c48 = arith.constant 48 : index
      %c0_34 = arith.constant 0 : index
      %31 = vector.load %arg9[%c48, %c0_34] : memref<56x128xf32, #tpu.memory_space<vmem>>, vector<8x128xf32>
      tpu.vector_store %arg9[%c48, %c0_34], %30 {strides = array<i32>} : memref<56x128xf32, #tpu.memory_space<vmem>>, vector<8x128xf32>,
    } else {
    }
    %c0 = arith.constant 0 : index
    %c0_1 = arith.constant 0 : index
    %3 = vector.load %arg5[%c0, %c0_1] : memref<32x56xf32, #tpu.memory_space<vmem>>, vector<32x56xf32>
    %c0_2 = arith.constant 0 : index
    %c0_3 = arith.constant 0 : index
    %4 = vector.load %arg9[%c0_2, %c0_3] : memref<56x128xf32, #tpu.memory_space<vmem>>, vector<56x128xf32>
    %cst = arith.constant dense<0.000000e+00> : vector<32x128xf32>
    %5 = tpu.matmul %3, %4, %cst {dimension_numbers = #tpu.dot_dimension_numbers<[1], [0], [0], [1], [0, 0, 1, 1], [], []>} : vector<32x56xf32>, vector<56x128xf32>, vector<32x128xf32> -> vector<32x128xf32>
    %c0_4 = arith.constant 0 : index
    %c0_5 = arith.constant 0 : index
    %6 = vector.load %arg6[%c0_4, %c0_5] : memref<32x1xf32, #tpu.memory_space<vmem>>, vector<32x1xf32>
    %7 = vector.broadcast %6 : vector<32x1xf32> to vector<32x128xf32>
    %8 = arith.addf %5, %7 : vector<32x128xf32>
    %c0_6 = arith.constant 0 : index
    %c0_7 = arith.constant 0 : index
    %c0_8 = arith.constant 0 : index
    %9 = vector.load %arg7[%c0_6, %c0_7, %c0_8] : memref<1x32x128xf32, #tpu.memory_space<vmem>>, vector<1x32x128xf32>
    %10 = vector.shape_cast %9 : vector<1x32x128xf32> to vector<32x128xf32>
    %11 = vector.shape_cast %8 : vector<32x128xf32> to vector<1x32x128xf32>
    tpu.vector_store %arg7[%c0_6, %c0_7, %c0_8], %11 {strides = array<i32>} : memref<1x32x128xf32, #tpu.memory_space<vmem>>, vector<1x32x128xf32>,
    return
  }
  func.func @transform_0(%arg0: i32, %arg1: i32, %arg2: i32) -> (i32, i32, i32) {
    %c0_i32 = arith.constant 0 : i32
    %c0_i32_0 = arith.constant 0 : i32
    return %arg0, %c0_i32, %arg1 : i32, i32, i32
  }
  func.func @transform_1(%arg0: i32, %arg1: i32, %arg2: i32) -> (i32, i32, i32, i32) {
    %c0_i32 = arith.constant 0 : i32
    %c0_i32_0 = arith.constant 0 : i32
    %c0_i32_1 = arith.constant 0 : i32
    return %arg0, %arg1, %c0_i32, %c0_i32_0 : i32, i32, i32, i32
  }
  func.func @transform_2(%arg0: i32, %arg1: i32, %arg2: i32) -> (i32, i32) {
    %c0_i32 = arith.constant 0 : i32
    %c0_i32_0 = arith.constant 0 : i32
    return %arg2, %c0_i32 : i32, i32
  }
  func.func @transform_3(%arg0: i32, %arg1: i32, %arg2: i32) -> (i32, i32) {
    %c0_i32 = arith.constant 0 : i32
    %c0_i32_0 = arith.constant 0 : i32
    return %arg2, %c0_i32 : i32, i32
  }
  func.func @transform_4(%arg0: i32, %arg1: i32, %arg2: i32) -> (i32, i32, i32) {
    %c0_i32 = arith.constant 0 : i32
    return %arg0, %arg2, %arg1 : i32, i32, i32
  }
}

</mosaic_0001>

<bundles_post_ra>
// kernel: tpu_custom_call.1
= control target key start
LH: loop header
LB: loop body
LE: loop exit
PB: predicated region body
PF: predicated region fallthrough
CT: control target
= control target key end

     0   :  { %9 = vsyncpa [#allocation5], 0  ;;  %s1149_s0 = inlined_call_operand.hbm [shape: f32[2,8,128], index: 0, kind: input, shape index: {}]   ;;  %s1150_s1 = inlined_call_operand.hbm [shape: f32[2,1,8,128], index: 1, kind: input, shape index: {}]   ;;  %s1151_s2 = inlined_call_operand.vmem [shape: f32[32,56], index: 2, kind: input, shape index: {}]   ;;  %s1152_s3 = inlined_call_operand.vmem [shape: f32[32,1], index: 3, kind: input, shape index: {}]   ;;  %s1153_s4 = inlined_call_operand.hbm [shape: f32[2,32,128], index: 4, kind: output, shape index: {}]  }
   0x1   :  { %11 = vsyncpa [#allocation5 + $0x1], 0 }
   0x2   :  { %12 = vsyncpa [#allocation8], 0 }
   0x3   :  { %14 = vsyncpa [#allocation8 + $0x1], 0 }
   0x4   :  { %15 = vsyncpa [#allocation6], 0 }
   0x5   :  { %17 = vsyncpa [#allocation6 + $0x1], 0  ;;  %s989_s15 = smov 0   ;;  %s991_s16 = smov 0  }
   0x6   :  { %s993_s17 = smov 0   ;;  %s995_s18 = smov 0  }
   0x7   :  { %s997_s19 = smov 0   ;;  %s999_s20 = smov 0  }
   0x8 LB: > { %s653_s21 = sadd.s32 4294967295, %s953_s20   ;;  %s654_s22 = sadd.s32 4294967294, %s953_s20   ;;  %s953_s20 = sphi %s999_s20, %s23_s20   ;;  %s949_s19 = sphi %s997_s19, %s1165_s19   ;;  %s945_s18 = sphi %s995_s18, %s1164_s18   ;;  %s941_s17 = sphi %s993_s17, %s1163_s17   ;;  %s937_s16 = sphi %s991_s16, %s1162_s16   ;;  %s933_s15 = sphi %s989_s15, %s1161_s15  }
   0x9   : > { %s42_s23 = sadd.s32 1, %s949_s19  ;;  %s51_s24 = sadd.s32 1, %s941_s17 }
   0xa   : > { %p44_p0 = scmp.ge.s32.totalorder %s42_s23, 2  ;;  %p58_p1 = scmp.ne.s32.totalorder %s941_s17, %s937_s16 }
   0xb   : > { %p59_p2 = scmp.eq.s32.totalorder %s953_s20, 0  ;;  %p64_p3 = scmp.ne.s32.totalorder %s937_s16, %s933_s15 }
   0xc   : > { %s1167_s23 = smov (%p44_p0, %s42_s23), 0  ;;  %p65_p5 = scmp.eq.s32.totalorder %s653_s21, 0 }
   0xd   : > { %1155 = sst [smem:[#allocation13_spill]] %s1167_s23  ;;  %p1030_p4 = por %p59_p2, %p58_p1 }
   0xe   : > { %s46_s26 = ssub.s32 %s949_s19, %s1167_s23  ;;  %p172_p6 = scmp.eq.s32.totalorder %s653_s21, 1 }
   0xf   : > { %p49_p7 = scmp.eq.s32.totalorder %s46_s26, 0  ;;  %p1036_p8 = por %p65_p5, %p64_p3 }
  0x10   : > { %p1040_p9 = por %p172_p6, %p58_p1  ;;  %p178_p10 = scmp.eq.s32.totalorder %s654_s22, 1 }
  0x11   : > { %s1045_s29 = scalar_select %p49_p7, %s941_s17, %s51_s24  }
  0x12   : > { %p1047_p11 = por %p178_p10, %p64_p3  ;;  %p658_p12 = scmp.ge.s32.totalorder %s953_s20, 2 }
  0x13   : > { %p715_p13 = scmp.lt.s32.totalorder %s953_s20, 2  ;;  %s216_s5 = sand.u32 1, %s941_s17  }
  0x14   : > { %s659_s6 = sshll.u32 %s216_s5, 3  ;;  %s660_s7 = sshll.u32 %s949_s19, 3 }
  0x15   : > { %s225_s10 = scalar_lea.hbm %s1149_s0, %s660_s7  ;;  %s220_s11 = scalar_lea.vmem [#allocation4], %s659_s6 }
  0x16   : > { %s229_s12 = sshll.u32 %s220_s11, 4  ;;  %s227_s13 = sshll.u32 %s225_s10, 4  ;;  %s230_s12 = int_to_ptr.vmem [resolvable:$true] %s229_s12  ;;  %s228_s13 = int_to_ptr.hbm [resolvable:$true] %s227_s13 }
  0x17   : > { %p705_p0 = pnand %p715_p13, %p1030_p4  ;;  %p663_p1 = scmp.ge.s32.totalorder %s953_s20, 1 }
  0x18   : > { %p254_p2 = scmp.lt.s32.totalorder %s953_s20, 3  ;;  %s217_s14 = scalar_lea.sflag [#allocation5], %s216_s5 }
  0x19   : > { %707 = dma.hbm_to_vmem [thread:$0]  (!%p705_p0), %s228_s13, 128, %s230_s12, %s217_s14  }
  0x1a   : > { %p255_p3 = pnand %p663_p1, %p254_p2  ;;  %s245_s24 = scalar_lea.hbm %s1150_s1, %s660_s7 }
  0x1b   : > { %s240_s26 = scalar_lea.vmem [#allocation7], %s659_s6  ;;  %s247_s8 = sshll.u32 %s245_s24, 4  ;;  %s248_s8 = int_to_ptr.hbm [resolvable:$true] %s247_s8 }
  0x1c   : > { %s249_s23 = sshll.u32 %s240_s26, 4  ;;  %s237_s9 = scalar_lea.sflag [#allocation8], %s216_s5  ;;  %s250_s23 = int_to_ptr.vmem [resolvable:$true] %s249_s23 }
  0x1d   : > { %710 = dma.hbm_to_vmem [thread:$0]  (!%p705_p0), %s248_s8, 128, %s250_s23, %s237_s9  }
  0x1e   : > { %258 = sbr.rel (%p255_p3) target bundleno = 318 (0x13e), region = 36  ;;  %s1066_s25 = sand.u32 (!%p255_p3), 1, %s937_s16  }
  0x1f   : > { %s664_s10 = sshll.u32 (!%p255_p3), %s1066_s25, 3  ;;  %s261_s11 = scalar_lea.sflag (!%p255_p3), [#allocation5], %s1066_s25 }
  0x20   : > { %s264_s12 = scalar_lea.vmem (!%p255_p3), [#allocation4], %s664_s10 }
  0x23   : > { %920 = dma.done.wait (%p1036_p8), %s261_s11, 128  }
  0x24   : > { %922 = vsyncadd (%p1036_p8), %s261_s11, 4294967168  ;;  %s271_s6 = scalar_lea.sflag [#allocation8], %s1066_s25  ;;  %s274_s5 = scalar_lea.vmem [#allocation7], %s664_s10 }
  0x25   : > { %924 = dma.done.wait (%p1036_p8), %s271_s6, 128  }
  0x26   : > { %926 = vsyncadd (%p1036_p8), %s271_s6, 4294967168  ;;  %v1079_v0 = vld [vmem:[%s264_s12] sm:$0xff]  ;;  %v333_v1 = vld [vmem:[%s274_s5] sm:$0xff]  ;;  %s955_s23 = smov 122   ;;  %s956_s7 = smov 124   ;;  %v961_v3 = vmov 0  }
  0x27   : > { %v774_v2 = vpack.i.bf16 %v333_v1, %v1079_v0  ;;  %s957_s13 = smov 126   ;;  %s958_s14 = smov 123   ;;  %805 = vset.pattern.permute.xlu1 %v961_v3  ;;  %804 = vset.pattern.permute.xlu0 %v961_v3  ;;  %v422_v4 = vld [vmem:[%s1152_s3 + $0x8] sm:$0xff]  ;;  %v421_v5 = vld [vmem:[%s1152_s3] sm:$0xff]  ;;  %v423_v6 = vld [vmem:[%s1152_s3 + $0x10] sm:$0xff]  ;;  %vm406_vm0 = vcmask 998400  }
  0x28   : > { %s959_s21 = smov 125   ;;  %s960_s22 = smov 127   ;;  %806 = vset.pattern.permute.xlu2 %v961_v3  ;;  %v424_v8 = vld [vmem:[%s1152_s3 + $0x18] sm:$0xff]  ;;  %vm394_vm1 = vcmask 1006592   ;;  %vm382_vm2 = vcmask 1014784   ;;  %vm370_vm3 = vcmask 1022976  }
  0x29   : > { %775 = vrot.lane.b32.xlu0 %v774_v2, %s955_s23  ;;  %785 = vrot.lane.b32.xlu1 %v774_v2, %s956_s7  ;;  %vm358_vm4 = vcmask 1031168   ;;  %vm346_vm5 = vcmask 1039360   ;;  %v411_v32 = vld [vmem:[%s1151_s2 + $0x8] sm:$0xff]  ;;  %vm445_vm6 = vcmask 457728   ;;  %v412_v33 = vld [vmem:[%s1151_s2 + $0x10] sm:$0xff]  ;;  %s666_s27 = sshll.u32 %s1066_s25, 5 }
  0x2a   : > { %795 = vrot.lane.b32.xlu2 %v774_v2, %s957_s13  ;;  %v413_v34 = vld [vmem:[%s1151_s2 + $0x18] sm:$0xff]  ;;  %v410_v35 = vld [vmem:[%s1151_s2] sm:$0xff]  ;;  %s676_s24 = sshll.u32 %s945_s18, 5  ;;  %s314_s10 = scalar_lea.vmem [#allocation9], %s666_s27 }
  0x2b   : > { %s506_s9 = scalar_lea.hbm %s1153_s4, %s676_s24  ;;  %s507_s11 = sshll.u32 %s314_s10, 4  ;;  %s508_s11 = int_to_ptr.vmem [resolvable:$true] %s507_s11 }
  0x2c   : > { %s509_s12 = sshll.u32 %s506_s9, 4  ;;  %s492_s18 = scalar_lea.sflag [#allocation6], %s1066_s25  ;;  %s510_s12 = int_to_ptr.hbm [resolvable:$true] %s509_s12 }
  0x2d   : > { %s881_s6 = sshra.s32 %s510_s12, 4  ;;  %s887_s13 = scalar_lea.hbm %s1153_s4, 64  ;;  %s882_s6 = int_to_ptr.hbm [resolvable:$true] %s881_s6 }
  0x2e   : > { %s883_s5 = scalar_lea.hbm %s882_s6, 32  ;;  %p888_p7 = scmp.lt.s32.totalorder %s882_s6, %s1153_s4 }
  0x2f   : > { %p884_p4 = scmp.ne.s32.totalorder %s882_s6, %s883_s5  ;;  %p889_p8 = scmp.lt.s32.totalorder %s887_s13, %s883_s5 }
  0x31   : > { %780 = vrot.lane.b32.xlu0 %v774_v2, %s958_s14  ;;  %790 = vrot.lane.b32.xlu1 %v774_v2, %s959_s21  ;;  %p885_p5 = pnand %p884_p4, %p1040_p9  ;;  %p890_p10 = por %p889_p8, %p888_p7 }
  0x32   : > { %800 = vrot.lane.b32.xlu2 %v774_v2, %s960_s22 }
  0x33   : > { %p886_p6 = pneg %p885_p5 }
  0x35   : > { %p891_p13 = pnand %p890_p10, %p886_p6 }
  0x39   : > { %432 = vperm.xlu1 %805, %v422_v4   ;;  %427 = vperm.xlu0 %804, %v421_v5  }
  0x3a   : > { %437 = vperm.xlu2 %806, %v423_v6  }
  0x41   : > { %442 = vperm.xlu1 %805, %v424_v8  }
  0x84   : > { %v796_v7 = vpop.permute.xlu2 %795 }
  0x85   : > { %v798_v24 = vunpack.i.h.bf16 %v796_v7  ;;  %v797_v25 = vunpack.i.l.bf16 %v796_v7 }
  0x87   : > { %v359_v30 = vsel %vm358_vm4, %v797_v25, %v798_v24 }
  0x8c   : > { %v801_v22 = vpop.permute.xlu2 %800 }
  0x8d   : > { %v803_v27 = vunpack.i.h.bf16 %v801_v22  ;;  %v802_v28 = vunpack.i.l.bf16 %v801_v22 }
  0x8f   : > { %v347_v31 = vsel %vm346_vm5, %v802_v28, %v803_v27 }
  0x94   : > { %v438_v42 = vpop.permute.xlu2 %437 }
  0x9b   : > { %v776_v9 = vpop.permute.xlu0 %775  ;;  %v786_v10 = vpop.permute.xlu1 %785 }
  0x9c   : > { %v778_v11 = vunpack.i.h.bf16 %v776_v9  ;;  %v777_v12 = vunpack.i.l.bf16 %v776_v9  ;;  %v788_v14 = vunpack.i.h.bf16 %v786_v10  ;;  %v787_v15 = vunpack.i.l.bf16 %v786_v10 }
  0x9e   : > { %v407_v13 = vsel %vm406_vm0, %v777_v12, %v778_v11  ;;  %v383_v26 = vsel %vm382_vm2, %v787_v15, %v788_v14 }
  0x9f   : > { %467 = vmatpush.msra.mxu0 %v407_v13  ;;  %677 = vmatpush.msra.mxu1 %v407_v13 }
  0xa0   : > { %678 = vmatpush.msra.mxu2 %v407_v13  ;;  %679 = vmatpush.msra.mxu3 %v407_v13 }
  0xa3   : > { %v781_v16 = vpop.permute.xlu0 %780  ;;  %v791_v17 = vpop.permute.xlu1 %790 }
  0xa4   : > { %v783_v18 = vunpack.i.h.bf16 %v781_v16  ;;  %v782_v19 = vunpack.i.l.bf16 %v781_v16  ;;  %v793_v20 = vunpack.i.h.bf16 %v791_v17  ;;  %v792_v21 = vunpack.i.l.bf16 %v791_v17 }
  0xa6   : > { %v395_v23 = vsel %vm394_vm1, %v782_v19, %v783_v18  ;;  %v371_v29 = vsel %vm370_vm3, %v792_v21, %v793_v20 }
  0xa7   : > { %468 = vmatpush.msra.mxu0 %v395_v23  ;;  %680 = vmatpush.msra.mxu1 %v395_v23 }
  0xa8   : > { %681 = vmatpush.msra.mxu2 %v395_v23  ;;  %682 = vmatpush.msra.mxu3 %v395_v23 }
  0xa9   : > { %469 = vmatpush.msra.mxu0 %v383_v26  ;;  %683 = vmatpush.msra.mxu1 %v383_v26 }
  0xaa   : > { %684 = vmatpush.msra.mxu2 %v383_v26  ;;  %685 = vmatpush.msra.mxu3 %v383_v26 }
  0xab   : > { %470 = vmatpush.msra.mxu0 %v371_v29  ;;  %686 = vmatpush.msra.mxu1 %v371_v29  ;;  %v433_v36 = vpop.permute.xlu1 %432  ;;  %v428_v37 = vpop.permute.xlu0 %427 }
  0xac   : > { %687 = vmatpush.msra.mxu2 %v371_v29  ;;  %688 = vmatpush.msra.mxu3 %v371_v29 }
  0xad   : > { %471 = vmatpush.msra.mxu0 %v359_v30  ;;  %689 = vmatpush.msra.mxu1 %v359_v30 }
  0xae   : > { %690 = vmatpush.msra.mxu2 %v359_v30  ;;  %691 = vmatpush.msra.mxu3 %v359_v30 }
  0xaf   : > { %472 = vmatpush.msra.mxu0 %v347_v31  ;;  %692 = vmatpush.msra.mxu1 %v347_v31 }
  0xb0   : > { %693 = vmatpush.msra.mxu2 %v347_v31  ;;  %694 = vmatpush.msra.mxu3 %v347_v31 }
  0xb1   : > { %695 = vmatpush.msra.mxu1 %v1079_v0  ;;  %473 = vmatpush.msra.mxu0 %v1079_v0 }
  0xb2   : > { %696 = vmatpush.msra.mxu2 %v1079_v0  ;;  %697 = vmatpush.msra.mxu3 %v1079_v0 }
  0xb3   : > { %668 = vmatmul.msk.f32.vlgmr.msra.gmra.mxu1 %vm445_vm6, %v411_v32  ;;  %669 = vmatmul.msk.f32.vlgmr.msra.gmra.mxu2 %vm445_vm6, %v412_v33  ;;  %v443_v44 = vpop.permute.xlu1 %442 }
  0xb4   : > { %670 = vmatmul.msk.f32.vlgmr.msra.gmra.mxu3 %vm445_vm6, %v413_v34  ;;  %667 = vmatmul.msk.f32.vlgmr.msra.gmra.mxu0 %vm445_vm6, %v410_v35 }
 0x130   : > { %v478_v38 = vpop.f32.mrf.mxu1 }
 0x131   : > { %v479_v39 = vadd.f32 %v478_v38, %v433_v36  ;;  %v475_v40 = vpop.f32.mrf.mxu0 }
 0x132   : > { %v476_v41 = vadd.f32 %v475_v40, %v428_v37 }
 0x133   : > { %488 = vst [vmem:[%s314_s10 + $0x8] sm:$0xff] %v479_v39 }
 0x134   : > { %487 = vst [vmem:[%s314_s10] sm:$0xff] %v476_v41 }
 0x136   : > { %v481_v43 = vpop.f32.mrf.mxu2 }
 0x137   : > { %v482_v45 = vadd.f32 %v481_v43, %v438_v42  ;;  %v484_v46 = vpop.f32.mrf.mxu3 }
 0x138   : > { %v485_v47 = vadd.f32 %v484_v46, %v443_v44 }
 0x139   : > { %489 = vst [vmem:[%s314_s10 + $0x10] sm:$0xff] %v482_v45 }
 0x13a   : > { %490 = vst [vmem:[%s314_s10 + $0x18] sm:$0xff] %v485_v47 }
 0x13b   : > { %894 = shalt.err (!%p891_p13)
}
 0x13c   : > { %s962_s25 = smov 128   ;;  %s963_s22 = smov 8  }
 0x13d   : > { %702 = dma.vmem_to_hbm [thread:$0]  (%p1040_p9), %s508_s11, 512, %s510_s12, %s492_s18, %s962_s25, %s962_s25, %s963_s22  }
 0x13e PF: > { %s524_s27 = sand.u32 1, %s933_s15   ;;  %p712_p0 = pnand %p658_p12, %p1047_p11 }
 0x13f   : > { %s525_s24 = scalar_lea.sflag [#allocation6], %s524_s27 }
 0x140   : > { %p713_p1 = pneg %p712_p0 }
 0x142   : > { %928 = dma.done.wait (%p713_p1), %s525_s24, 512  }
 0x143   : > { %930 = vsyncadd (%p713_p1), %s525_s24, 4294966784  ;;  %s23_s20 = sadd.s32 1, %s953_s20   ;;  %s1160_s28 = sld [smem:[#allocation13_spill]] }
 0x144   : > { %p20_p2 = scmp.ge.s32.totalorder %s23_s20, 4   ;;  %s1161_s15 = smov %s937_s16 }
 0x145   : > { %s1162_s16 = smov %s941_s17  ;;  %s1163_s17 = smov %s1045_s29 }
 0x146   : > { %s1164_s18 = smov %s949_s19  ;;  %22 = sbr.rel (!%p20_p2) target bundleno = 8 (0x8), region = 104 }
 0x149   : > { %s1165_s19 = smov %s1160_s28 }
 0x14b   :  { %531 = vsyncpa [#allocation5], 1 }
 0x14c   :  { %533 = vsyncpa [#allocation5 + $0x1], 1 }
 0x14d   :  { %534 = vsyncpa [#allocation8], 1 }
 0x14e   :  { %536 = vsyncpa [#allocation8 + $0x1], 1 }
 0x14f   :  { %537 = vsyncpa [#allocation6], 1 }
 0x150   :  { %539 = vsyncpa [#allocation6 + $0x1], 1 }

</bundles_post_ra>
